<compile_context>
chip_gen: v7x
topology: tpu7x:2x2x1
jax: 0.10.0
libtpu: 0.0.40
codegen_flags: <defaults>
</compile_context>

<pallas_src>
import functools

import jax
import jax.numpy as jnp
from jax import lax
from jax.experimental import pallas as pl
from jax.experimental.pallas import tpu as pltpu

LANE = 128


def _attention2d_kernel(x_ref, w1r_ref, b1_ref, oneb_ref, w2t_ref, b2_ref,
                        out_ref, acc_ref, *, n_chunks, tail_full, tail_rem):
    """One (row-block i, HW-tile j) grid step.

    x_ref   : (row_tile, thw)   input tile (native dtype)
    w1r_ref : (row_tile, K)     fc1 weights; row r holds W1[:, r % C] / (H*W)
    b1_ref  : (1, K)            fc1 bias
    oneb_ref: (nb_pb, row_tile) per-batch segment-sum one-hot (precomputed)
    w2t_ref : (K, K)            fc2 weight, already transposed
    b2_ref  : (1, K)            fc2 bias
    out_ref : (nb_pb, K)        softmax attention for this row block's batches
    acc_ref : (row_tile, 128)   f32 partial-sum accumulator (VMEM scratch)
    """
    j = pl.program_id(1)
    nj = pl.num_programs(1)

    @pl.when(j == 0)
    def _init():
        acc_ref[...] = jnp.zeros_like(acc_ref)

    # ---- streaming phase: pure vld + vadd ---------------------------------
    # Each 128-lane chunk of the tile is added into the lane-wide accumulator;
    # the cross-lane (XLU) reduce happens only once, in the finalize step.
    def accumulate(n_full, rem):
        acc = acc_ref[...]
        if n_full > 0:
            if n_full <= 16:
                for c in range(n_full):                  # static unroll
                    acc = acc + x_ref[:, pl.ds(c * LANE, LANE)].astype(
                        jnp.float32)
            else:
                def body(c, a):
                    off = pl.multiple_of(c * LANE, LANE)
                    return a + x_ref[:, pl.ds(off, LANE)].astype(jnp.float32)

                acc = lax.fori_loop(0, n_full, body, acc, unroll=8)
        if rem > 0:
            # Ragged HW tail: mask the lanes past the true H*W with a select
            # (garbage in the padded region of the block buffer must not leak).
            lane = lax.broadcasted_iota(jnp.int32, acc.shape, 1)
            v = x_ref[:, pl.ds(n_full * LANE, LANE)].astype(jnp.float32)
            acc = acc + jnp.where(lane < rem, v, jnp.zeros_like(v))
        acc_ref[...] = acc

    if tail_full == n_chunks and tail_rem == 0:
        accumulate(n_chunks, 0)                          # uniform tiles
    else:
        @pl.when(j < nj - 1)
        def _full_tiles():
            accumulate(n_chunks, 0)

        @pl.when(j == nj - 1)
        def _tail_tile():
            accumulate(tail_full, tail_rem)

    # ---- epilogue: tiny fc1 / fc2 / softmax, only after the last HW tile ---
    @pl.when(j == nj - 1)
    def _finalize():
        # Single lane reduce: (row_tile, 128) -> (row_tile, 1).  The 1/(H*W)
        # mean scale is already folded into w1r.
        s = jnp.sum(acc_ref[...], axis=1, keepdims=True)        # (row_tile, 1)
        t = s * w1r_ref[...]                                    # (row_tile, K)

        # Per-batch segment sum over the C rows of each batch via the
        # precomputed one-hot (no in-kernel iota / one-hot materialization).
        y1 = jnp.dot(oneb_ref[...], t,
                     preferred_element_type=jnp.float32) + b1_ref[...]
        y1 = jnp.maximum(y1, 0.0)                               # ReLU
        y2 = jnp.dot(y1, w2t_ref[...],
                     preferred_element_type=jnp.float32) + b2_ref[...]

        # Numerically stable softmax over K with the EXACT reciprocal so each
        # row sums to 1 (these are Dynamic_conv2d aggregation weights).
        m = jnp.max(y2, axis=-1, keepdims=True)
        e = jnp.exp(y2 - m)
        denom = jnp.sum(e, axis=-1, keepdims=True)
        out_ref[...] = e / denom


def _vmem_plan():
    """Per-generation (max input-tile bytes, scoped VMEM limit bytes)."""
    cap = None
    try:
        cap = getattr(pltpu.get_tpu_info(), "vmem_capacity_bytes", None)
    except Exception:
        cap = None
    kind = ""
    try:
        kind = jax.devices()[0].device_kind.lower()
    except Exception:
        pass
    is_v7 = ("v7" in kind) or ("7x" in kind) or (
        cap is not None and cap <= (64 << 20))
    if is_v7:
        # 64 MiB physical per TC: 2 x 14 MiB double-buffered input + <1 MiB
        # acc/weights stays well under a 46 MiB scoped limit (~16 MiB headroom).
        return 14 << 20, 46 << 20
    if "v6" in kind:
        # 128 MiB physical: few, large DMAs.
        return 16 << 20, 64 << 20
    # v5e / unknown: 128 MiB physical VMEM, ~0.8 TB/s HBM.
    return 8 << 20, 40 << 20


def _batches_per_block(B, C):
    """Whole batches per row block; keeps row_tile = nb_pb * C ~<= 128 sublanes
    so the f32 accumulator stays in vregs, and divides B so no ragged rows."""
    if C >= 128:
        return 1
    limit = max(1, 128 // C)
    best = 1
    for d in range(1, min(B, limit) + 1):
        if B % d == 0:
            best = d
    return best


def _choose_hw_tile(HW, max_lanes):
    """Lane tile (multiple of 128). Prefer a divisor of HW (no tail masking)."""
    max_lanes = max(LANE, (max_lanes // LANE) * LANE)
    if HW <= max_lanes:
        return pl.cdiv(HW, LANE) * LANE          # single (maybe ragged) tile
    for t in range(max_lanes, LANE - 1, -LANE):  # largest 128-multiple divisor
        if HW % t == 0:
            return t
    return max_lanes                             # no divisor: ragged last tile


def attention2d_forward(x_nchw, w1, b1, w2, b2):
    """x_nchw: (B, C, H, W); w1: (K, C, 1, 1); b1: (K,); w2: (K, K, 1, 1); b2: (K,)."""
    B, C, H, W = x_nchw.shape
    K = w1.shape[0]
    HW = H * W

    tile_bytes, vmem_limit = _vmem_plan()

    nb_pb = _batches_per_block(B, C)     # batches per row block
    row_tile = nb_pb * C                 # rows per row block
    g_rb = B // nb_pb                    # row-block grid extent

    itemsize = jnp.dtype(x_nchw.dtype).itemsize
    max_lanes = max(LANE, tile_bytes // max(1, row_tile * itemsize))
    thw = _choose_hw_tile(HW, max_lanes)
    n_chunks = thw // LANE
    g_hw = pl.cdiv(HW, thw)
    tail_cols = HW - (g_hw - 1) * thw    # valid columns in the last HW tile
    tail_full = tail_cols // LANE
    tail_rem = tail_cols % LANE

    # (B, C, H, W) -> (row_blocks, row_tile, HW): free reshape of contiguous
    # NCHW; the input keeps its native dtype (no HBM copy, no padding copy).
    x3 = x_nchw.reshape(g_rb, row_tile, HW)

    # fc weights as small dense matrices; fold the mean scale into fc1.
    w1_2d = w1.reshape(K, C).astype(jnp.float32)
    w2_2d = w2.reshape(K, K).astype(jnp.float32)
    w1rep = jnp.tile(w1_2d.T * (1.0 / HW), (nb_pb, 1))   # (row_tile, K)
    w2t = w2_2d.T                                        # (K, K)
    b1_row = b1.reshape(1, K).astype(jnp.float32)
    b2_row = b2.reshape(1, K).astype(jnp.float32)

    # Per-batch segment-sum one-hot, computed once here (tiny), not in-kernel.
    row_batch = jnp.arange(row_tile, dtype=jnp.int32) // C
    oneb = (row_batch[None, :] == jnp.arange(nb_pb, dtype=jnp.int32)[:, None]
            ).astype(jnp.float32)                        # (nb_pb, row_tile)

    kernel = functools.partial(_attention2d_kernel, n_chunks=n_chunks,
                               tail_full=tail_full, tail_rem=tail_rem)

    out3 = pl.pallas_call(
        kernel,
        out_shape=jax.ShapeDtypeStruct((g_rb, nb_pb, K), jnp.float32),
        grid_spec=pltpu.PrefetchScalarGridSpec(
            num_scalar_prefetch=0,
            grid=(g_rb, g_hw),
            in_specs=[
                pl.BlockSpec((None, row_tile, thw), lambda i, j: (i, 0, j)),
                pl.BlockSpec((row_tile, K), lambda i, j: (0, 0)),
                pl.BlockSpec((1, K), lambda i, j: (0, 0)),
                pl.BlockSpec((nb_pb, row_tile), lambda i, j: (0, 0)),
                pl.BlockSpec((K, K), lambda i, j: (0, 0)),
                pl.BlockSpec((1, K), lambda i, j: (0, 0)),
            ],
            out_specs=pl.BlockSpec((None, nb_pb, K), lambda i, j: (i, 0, 0)),
            scratch_shapes=[pltpu.VMEM((row_tile, LANE), jnp.float32)],
        ),
        compiler_params=pltpu.CompilerParams(
            dimension_semantics=("parallel", "arbitrary"),
            vmem_limit_bytes=vmem_limit,
        ),
    )(x3, w1rep, b1_row, oneb, w2t, b2_row)

    return out3.reshape(B, K)


def _reference(x_nchw, w1, b1, w2, b2):
    B, C, H, W = x_nchw.shape
    K = w1.shape[0]
    pooled = jnp.mean(x_nchw.astype(jnp.float32), axis=(2, 3))   # (B, C)
    y1 = jnp.maximum(pooled @ w1.reshape(K, C).T + b1, 0.0)      # (B, K)
    y2 = y1 @ w2.reshape(K, K).T + b2                            # (B, K)
    return jax.nn.softmax(y2, axis=1)


if __name__ == "__main__":
    # Small shapes consistent with the module: in_planes=4, K=8.
    B, C, H, W, K = 2, 4, 16, 16, 8

    key = jax.random.PRNGKey(0)
    kx, kw1, kb1, kw2, kb2 = jax.random.split(key, 5)

    x = jax.random.normal(kx, (B, C, H, W), dtype=jnp.float32)
    # Deterministic synthetic parameters (shapes from attention2d.__init__).
    w1 = jax.random.normal(kw1, (K, C, 1, 1), dtype=jnp.float32) * 0.5
    b1 = jax.random.normal(kb1, (K,), dtype=jnp.float32) * 0.1
    w2 = jax.random.normal(kw2, (K, K, 1, 1), dtype=jnp.float32) * 0.5
    b2 = jax.random.normal(kb2, (K,), dtype=jnp.float32) * 0.1

    out = jax.block_until_ready(attention2d_forward(x, w1, b1, w2, b2))
    ref = _reference(x, w1, b1, w2, b2)

    assert out.shape == (B, K)
    assert jnp.allclose(out, ref, atol=2e-3, rtol=2e-3), (out, ref)
    # Exact reciprocal in the softmax -> rows sum to 1 to f32 rounding.
    assert jnp.allclose(jnp.sum(out, axis=1), jnp.ones((B,)), atol=1e-3)

    print("KERNEL_OK")
</pallas_src>

<mosaic_0001>
module attributes {stable_mosaic.version = 11 : i64} {
  func.func @_attention2d_kernel(%arg0: i32, %arg1: i32, %arg2: memref<1x8x256xf32, #tpu.memory_space<vmem>>, %arg3: memref<8x8xf32, #tpu.memory_space<vmem>>, %arg4: memref<1x8xf32, #tpu.memory_space<vmem>>, %arg5: memref<2x8xf32, #tpu.memory_space<vmem>>, %arg6: memref<8x8xf32, #tpu.memory_space<vmem>>, %arg7: memref<1x8xf32, #tpu.memory_space<vmem>>, %arg8: memref<1x2x8xf32, #tpu.memory_space<vmem>>, %arg9: memref<8x128xf32, #tpu.memory_space<vmem>>) attributes {dimension_semantics = [#tpu.dimension_semantics<parallel>, #tpu.dimension_semantics<arbitrary>], iteration_bounds = array<i64: 1, 1>, scalar_prefetch = 0 : i64, scratch_operands = 1 : i64, tpu.core_type = #tpu.core_type<tc>, window_params = [{transform_indices = @transform_0, window_bounds = array<i64: 1, 8, 256>}, {pipeline_mode = #tpu.pipeline_mode<synchronous>, transform_indices = @transform_1, window_bounds = array<i64: 8, 8>}, {pipeline_mode = #tpu.pipeline_mode<synchronous>, transform_indices = @transform_2, window_bounds = array<i64: 1, 8>}, {pipeline_mode = #tpu.pipeline_mode<synchronous>, transform_indices = @transform_3, window_bounds = array<i64: 2, 8>}, {pipeline_mode = #tpu.pipeline_mode<synchronous>, transform_indices = @transform_4, window_bounds = array<i64: 8, 8>}, {pipeline_mode = #tpu.pipeline_mode<synchronous>, transform_indices = @transform_5, window_bounds = array<i64: 1, 8>}, {transform_indices = @transform_6, window_bounds = array<i64: 1, 2, 8>}]} {
    %c0_i32 = arith.constant 0 : i32
    %0 = arith.cmpi eq, %arg1, %c0_i32 : i32
    %1 = arith.extui %0 : i1 to i32
    %c0_i32_0 = arith.constant 0 : i32
    %2 = arith.cmpi ne, %1, %c0_i32_0 : i32
    scf.if %2 {
      %cst = arith.constant 0.000000e+00 : f32
      %14 = vector.broadcast %cst : f32 to vector<8x128xf32>
      %c0_11 = arith.constant 0 : index
      %c0_12 = arith.constant 0 : index
      %15 = vector.load %arg9[%c0_11, %c0_12] : memref<8x128xf32, #tpu.memory_space<vmem>>, vector<8x128xf32>
      tpu.vector_store %arg9[%c0_11, %c0_12], %14 {strides = array<i32>} : memref<8x128xf32, #tpu.memory_space<vmem>>, vector<8x128xf32>,
    } else {
    }
    %c0 = arith.constant 0 : index
    %c0_1 = arith.constant 0 : index
    %3 = vector.load %arg9[%c0, %c0_1] : memref<8x128xf32, #tpu.memory_space<vmem>>, vector<8x128xf32>
    %c0_2 = arith.constant 0 : index
    %c0_3 = arith.constant 0 : index
    %c0_4 = arith.constant 0 : index
    %4 = vector.load %arg2[%c0_2, %c0_3, %c0_4] : memref<1x8x256xf32, #tpu.memory_space<vmem>>, vector<1x8x128xf32>
    %5 = vector.shape_cast %4 : vector<1x8x128xf32> to vector<8x128xf32>
    %6 = arith.addf %3, %5 : vector<8x128xf32>
    %c0_5 = arith.constant 0 : index
    %c0_6 = arith.constant 0 : index
    %c128 = arith.constant 128 : index
    %7 = vector.load %arg2[%c0_5, %c0_6, %c128] : memref<1x8x256xf32, #tpu.memory_space<vmem>>, vector<1x8x128xf32>
    %8 = vector.shape_cast %7 : vector<1x8x128xf32> to vector<8x128xf32>
    %9 = arith.addf %6, %8 : vector<8x128xf32>
    %c0_7 = arith.constant 0 : index
    %c0_8 = arith.constant 0 : index
    %10 = vector.load %arg9[%c0_7, %c0_8] : memref<8x128xf32, #tpu.memory_space<vmem>>, vector<8x128xf32>
    tpu.vector_store %arg9[%c0_7, %c0_8], %9 {strides = array<i32>} : memref<8x128xf32, #tpu.memory_space<vmem>>, vector<8x128xf32>,
    %c0_i32_9 = arith.constant 0 : i32
    %11 = arith.cmpi eq, %arg1, %c0_i32_9 : i32
    %12 = arith.extui %11 : i1 to i32
    %c0_i32_10 = arith.constant 0 : i32
    %13 = arith.cmpi ne, %12, %c0_i32_10 : i32
    scf.if %13 {
      %c0_11 = arith.constant 0 : index
      %c0_12 = arith.constant 0 : index
      %14 = vector.load %arg9[%c0_11, %c0_12] : memref<8x128xf32, #tpu.memory_space<vmem>>, vector<8x128xf32>
      %cst = arith.constant dense<0.000000e+00> : vector<8xf32>
      %15 = vector.multi_reduction <add>, %14, %cst [1] : vector<8x128xf32> to vector<8xf32>
      %16 = vector.shape_cast %15 : vector<8xf32> to vector<8x1xf32>
      %c0_13 = arith.constant 0 : index
      %c0_14 = arith.constant 0 : index
      %17 = vector.load %arg3[%c0_13, %c0_14] : memref<8x8xf32, #tpu.memory_space<vmem>>, vector<8x8xf32>
      %18 = vector.broadcast %16 : vector<8x1xf32> to vector<8x8xf32>
      %19 = arith.mulf %18, %17 : vector<8x8xf32>
      %c0_15 = arith.constant 0 : index
      %c0_16 = arith.constant 0 : index
      %20 = vector.load %arg5[%c0_15, %c0_16] : memref<2x8xf32, #tpu.memory_space<vmem>>, vector<2x8xf32>
      %cst_17 = arith.constant dense<0.000000e+00> : vector<2x8xf32>
      %21 = tpu.matmul %20, %19, %cst_17 {dimension_numbers = #tpu.dot_dimension_numbers<[1], [0], [0], [1], [0, 0, 1, 1], [], []>} : vector<2x8xf32>, vector<8x8xf32>, vector<2x8xf32> -> vector<2x8xf32>
      %c0_18 = arith.constant 0 : index
      %c0_19 = arith.constant 0 : index
      %22 = vector.load %arg4[%c0_18, %c0_19] : memref<1x8xf32, #tpu.memory_space<vmem>>, vector<1x8xf32>
      %23 = vector.broadcast %22 : vector<1x8xf32> to vector<2x8xf32>
      %24 = arith.addf %21, %23 : vector<2x8xf32>
      %cst_20 = arith.constant 0.000000e+00 : f32
      %25 = vector.broadcast %cst_20 : f32 to vector<2x8xf32>
      %26 = arith.maximumf %24, %25 : vector<2x8xf32>
      %c0_21 = arith.constant 0 : index
      %c0_22 = arith.constant 0 : index
      %27 = vector.load %arg6[%c0_21, %c0_22] : memref<8x8xf32, #tpu.memory_space<vmem>>, vector<8x8xf32>
      %cst_23 = arith.constant dense<0.000000e+00> : vector<2x8xf32>
      %28 = tpu.matmul %26, %27, %cst_23 {dimension_numbers = #tpu.dot_dimension_numbers<[1], [0], [0], [1], [0, 0, 1, 1], [], []>} : vector<2x8xf32>, vector<8x8xf32>, vector<2x8xf32> -> vector<2x8xf32>
      %c0_24 = arith.constant 0 : index
      %c0_25 = arith.constant 0 : index
      %29 = vector.load %arg7[%c0_24, %c0_25] : memref<1x8xf32, #tpu.memory_space<vmem>>, vector<1x8xf32>
      %30 = vector.broadcast %29 : vector<1x8xf32> to vector<2x8xf32>
      %31 = arith.addf %28, %30 : vector<2x8xf32>
      %cst_26 = arith.constant dense<0xFF800000> : vector<2xf32>
      %32 = vector.multi_reduction <maximumf>, %31, %cst_26 [1] : vector<2x8xf32> to vector<2xf32>
      %33 = vector.shape_cast %32 : vector<2xf32> to vector<2x1xf32>
      %34 = vector.broadcast %33 : vector<2x1xf32> to vector<2x8xf32>
      %35 = arith.subf %31, %34 : vector<2x8xf32>
      %36 = math.exp %35 : vector<2x8xf32>
      %cst_27 = arith.constant dense<0.000000e+00> : vector<2xf32>
      %37 = vector.multi_reduction <add>, %36, %cst_27 [1] : vector<2x8xf32> to vector<2xf32>
      %38 = vector.shape_cast %37 : vector<2xf32> to vector<2x1xf32>
      %39 = vector.broadcast %38 : vector<2x1xf32> to vector<2x8xf32>
      %40 = arith.divf %36, %39 : vector<2x8xf32>
      %c0_28 = arith.constant 0 : index
      %c0_29 = arith.constant 0 : index
      %c0_30 = arith.constant 0 : index
      %41 = vector.load %arg8[%c0_28, %c0_29, %c0_30] : memref<1x2x8xf32, #tpu.memory_space<vmem>>, vector<1x2x8xf32>
      %42 = vector.shape_cast %41 : vector<1x2x8xf32> to vector<2x8xf32>
      %43 = vector.shape_cast %40 : vector<2x8xf32> to vector<1x2x8xf32>
      tpu.vector_store %arg8[%c0_28, %c0_29, %c0_30], %43 {strides = array<i32>} : memref<1x2x8xf32, #tpu.memory_space<vmem>>, vector<1x2x8xf32>,
    } else {
    }
    return
  }
  func.func @transform_0(%arg0: i32, %arg1: i32) -> (i32, i32, i32) {
    %c0_i32 = arith.constant 0 : i32
    %c0_i32_0 = arith.constant 0 : i32
    return %arg0, %c0_i32, %arg1 : i32, i32, i32
  }
  func.func @transform_1(%arg0: i32, %arg1: i32) -> (i32, i32) {
    %c0_i32 = arith.constant 0 : i32
    %c0_i32_0 = arith.constant 0 : i32
    %c0_i32_1 = arith.constant 0 : i32
    return %c0_i32, %c0_i32_0 : i32, i32
  }
  func.func @transform_2(%arg0: i32, %arg1: i32) -> (i32, i32) {
    %c0_i32 = arith.constant 0 : i32
    %c0_i32_0 = arith.constant 0 : i32
    %c0_i32_1 = arith.constant 0 : i32
    return %c0_i32, %c0_i32_0 : i32, i32
  }
  func.func @transform_3(%arg0: i32, %arg1: i32) -> (i32, i32) {
    %c0_i32 = arith.constant 0 : i32
    %c0_i32_0 = arith.constant 0 : i32
    %c0_i32_1 = arith.constant 0 : i32
    return %c0_i32, %c0_i32_0 : i32, i32
  }
  func.func @transform_4(%arg0: i32, %arg1: i32) -> (i32, i32) {
    %c0_i32 = arith.constant 0 : i32
    %c0_i32_0 = arith.constant 0 : i32
    %c0_i32_1 = arith.constant 0 : i32
    return %c0_i32, %c0_i32_0 : i32, i32
  }
  func.func @transform_5(%arg0: i32, %arg1: i32) -> (i32, i32) {
    %c0_i32 = arith.constant 0 : i32
    %c0_i32_0 = arith.constant 0 : i32
    %c0_i32_1 = arith.constant 0 : i32
    return %c0_i32, %c0_i32_0 : i32, i32
  }
  func.func @transform_6(%arg0: i32, %arg1: i32) -> (i32, i32, i32) {
    %c0_i32 = arith.constant 0 : i32
    %c0_i32_0 = arith.constant 0 : i32
    %c0_i32_1 = arith.constant 0 : i32
    return %arg0, %c0_i32, %c0_i32_0 : i32, i32, i32
  }
}

</mosaic_0001>

<bundles_post_ra>
// kernel: tpu_custom_call.1
= control target key start
LH: loop header
LB: loop body
LE: loop exit
PB: predicated region body
PF: predicated region fallthrough
CT: control target
= control target key end

     0   :  { %11 = vsyncpa [#allocation4], 0  ;;  %s450_s0 = inlined_call_operand.hbm [shape: f32[1,8,256], index: 0, kind: input, shape index: {}]   ;;  %s451_s1 = inlined_call_operand.hbm [shape: f32[8,8], index: 1, kind: input, shape index: {}]   ;;  %s452_s2 = inlined_call_operand.vmem [shape: f32[1,8], index: 2, kind: input, shape index: {}]   ;;  %s453_s3 = inlined_call_operand.vmem [shape: f32[2,8], index: 3, kind: input, shape index: {}]   ;;  %s454_s4 = inlined_call_operand.vmem [shape: f32[8,8], index: 4, kind: input, shape index: {}]   ;;  %s455_s5 = inlined_call_operand.vmem [shape: f32[1,8], index: 5, kind: input, shape index: {}]   ;;  %s456_s6 = inlined_call_operand.hbm [shape: f32[1,2,8], index: 6, kind: output, shape index: {}]  }
   0x1   :  { %12 = vsyncpa [#allocation7], 0 }
   0x2   :  { %13 = vsyncpa [#allocation5], 0  ;;  %s359_s21 = smov [#allocation3]   ;;  %s360_s23 = smov [#allocation6]  }
   0x3   :  { %s20_s22 = sshll.u32 %s359_s21, 4  ;;  %s30_s24 = sshll.u32 %s360_s23, 4  ;;  %s21_s22 = int_to_ptr.vmem [resolvable:$true] %s20_s22  ;;  %s31_s24 = int_to_ptr.vmem [resolvable:$true] %s30_s24 }
   0x4   :  { %s287_s27 = scalar_lea.hbm %s450_s0, 256 }
   0x5   :  { %p288_p0 = scmp.ne.s32.totalorder %s450_s0, %s287_s27  ;;  %p291_p1 = scmp.lt.u32.totalorder %s287_s27, %s450_s0 }
   0x7   :  { %p293_p2 = pnand %p291_p1, %p288_p0 }
   0x9   :  { %296 = shalt.err (!%p293_p2)
}
   0xa   :  { %s297_s8 = scalar_lea.vmem %s21_s22, 256  ;;  %p302_p4 = scmp.lt.s32.totalorder %s21_s22, %s21_s22 }
   0xb   :  { %p298_p3 = scmp.ne.s32.totalorder %s21_s22, %s297_s8  ;;  %p303_p5 = scmp.lt.s32.totalorder %s297_s8, %s297_s8 }
   0xd   :  { %p304_p6 = por %p303_p5, %p302_p4 }
   0xf   :  { %p305_p7 = pnand %p304_p6, %p298_p3 }
  0x11   :  { %308 = shalt.err (!%p305_p7)
}
  0x12   :  { %23 = dma.hbm_to_vmem [thread:$0]  %s450_s0, 256, %s21_s22, [#allocation4]  }
  0x13   :  { %s309_s13 = scalar_lea.hbm %s451_s1, 128 }
  0x14   :  { %p310_p8 = scmp.ne.s32.totalorder %s451_s1, %s309_s13  ;;  %p313_p9 = scmp.lt.u32.totalorder %s309_s13, %s451_s1 }
  0x16   :  { %p315_p10 = pnand %p313_p9, %p310_p8 }
  0x18   :  { %318 = shalt.err (!%p315_p10)
}
  0x19   :  { %s319_s18 = scalar_lea.vmem %s31_s24, 128  ;;  %p324_p12 = scmp.lt.s32.totalorder %s31_s24, %s31_s24 }
  0x1a   :  { %p320_p11 = scmp.ne.s32.totalorder %s31_s24, %s319_s18  ;;  %p325_p13 = scmp.lt.s32.totalorder %s319_s18, %s319_s18 }
  0x1c   :  { %p326_p0 = por %p325_p13, %p324_p12 }
  0x1e   :  { %p327_p1 = pnand %p326_p0, %p320_p11 }
  0x20   :  { %330 = shalt.err (!%p327_p1)
}
  0x21   :  { %33 = dma.hbm_to_vmem [thread:$0]  %s451_s1, 128, %s31_s24, [#allocation7]  }
  0x22   :  { %353 = dma.done.wait [#allocation4], 256  }
  0x23   :  { %354 = vsyncadd [#allocation4], 4294967040 }
  0x24   :  { %355 = dma.done.wait [#allocation7], 128  }
  0x25   :  { %356 = vsyncadd [#allocation7], 4294967168  ;;  %v54_v0 = vld [vmem:[#allocation3] sm:$0xff]  ;;  %v56_v1 = vld [vmem:[#allocation3 + $0x8] sm:$0xff]  ;;  %v361_v3 = vmov 0.0   ;;  %vm362_vm0 = vmmov 0  }
  0x26   :  { %v57_v2 = vadd.f32 %v56_v1, %v54_v0  ;;  %268 = vmatprep.subr.mxu0 %v361_v3  ;;  %273 = vmatprep.subr.mxu1 %v361_v3  ;;  %v65_v4 = vld [vmem:[#allocation6] sm:$0xff]  ;;  %v67_v7 = vld [vmem:[%s453_s3] sm:$0x3]  ;;  %vm75_vm1 = vcmask 64512   ;;  %vm231_vm2 = vcmask 58368  }
  0x27   :  { %270 = vmatprep.mubr.msk.f32.mxu0 %vm362_vm0, %v361_v3  ;;  %275 = vmatprep.mubr.msk.f32.mxu1 %vm362_vm0, %v361_v3  ;;  %v150_v8 = vld [vmem:[%s454_s4] sm:$0xff] }
  0x28   :  { %63 = vadd.xlane.f32.xlu0 %v57_v2  ;;  %274 = vmatpush3.msra.mxu1 %v150_v8  ;;  %v260_v9 = vld [vmem:[%s452_s2] ss:$0 sm:$0xff]  ;;  %s363_s2 = smov [#allocation8]  }
  0x29   :  { %v262_v14 = vld [vmem:[%s455_s5] ss:$0 sm:$0xff]  ;;  %s250_s3 = sshll.u32 %s363_s2, 4  ;;  %s251_s3 = int_to_ptr.vmem [resolvable:$true] %s250_s3 }
  0x2a   :  { %s331_s4 = scalar_lea.vmem %s251_s3, 32  ;;  %p336_p3 = scmp.lt.s32.totalorder %s251_s3, %s251_s3 }
  0x2b   :  { %p332_p2 = scmp.ne.s32.totalorder %s251_s3, %s331_s4  ;;  %p337_p4 = scmp.lt.s32.totalorder %s331_s4, %s331_s4 }
  0x2d   :  { %p338_p5 = por %p337_p4, %p336_p3 }
  0x2f   :  { %p339_p6 = pnand %p338_p5, %p332_p2 }
  0xb5   :  { %v64_v5 = vpop.xlane.xlu0 %63 }
  0xb6   :  { %v66_v6 = vmul.f32 %v65_v4, %v64_v5 }
  0xb8   :  { %269 = vmatpush3.msra.mxu0 %v66_v6 }
  0xb9   :  { %271 = vmatmul.mubr.msk.f32.vlgmr.msra.gmra.mrb[0].mxu0 %vm75_vm1, %v67_v7 }
 0x18c   :  { %v145_v10 = vpop.f32.mrb[0].mxu0 }
 0x18d   :  { %v146_v11 = vadd.f32 %v260_v9, %v145_v10  ;;  %v272_v12 = vpop.f32.mrb[1].mxu0 }
 0x18f   :  { %v149_v13 = vmax.f32 %v146_v11, 0.0 }
 0x191   :  { %276 = vmatmul.mubr.msk.f32.vlgmr.msra.gmra.mrb[0].mxu1 %vm75_vm1, %v149_v13 }
 0x264   :  { %v227_v15 = vpop.f32.mrb[0].mxu1 }
 0x265   :  { %v228_v16 = vadd.f32 %v262_v14, %v227_v15  ;;  %v277_v17 = vpop.f32.mrb[1].mxu1 }
 0x267   :  { %v232_v18 = vsel %vm231_vm2, %v228_v16, -inf }
 0x268   :  { %233 = vmax.xlane.f32.xlu0 %v232_v18 }
 0x2f5   :  { %v234_v19 = vpop.xlane.xlu0 %233 }
 0x2f6   :  { %v235_v20 = vsub.f32 %v228_v16, %v234_v19 }
 0x2f8   :  { %v236_v21 = vmul.f32 1.442695, %v235_v20 }
 0x2fa   :  { %283 = vpow2.f32 %v236_v21 }
 0x304   :  { %v284_v22 = vpop.eup %283 }
 0x305   :  { %v238_v23 = vsel %vm231_vm2, %v284_v22, 0.0 }
 0x306   :  { %239 = vadd.xlane.f32.xlu1 %v238_v23 }
 0x393   :  { %v240_v24 = vpop.xlane.xlu1 %239 }
 0x394   :  { %285 = vrcp.f32 %v240_v24 }
 0x39e   :  { %v286_v25 = vpop.eup %285 }
 0x39f   :  { %v242_v26 = vmul.f32 %v286_v25, %v284_v22 }
 0x3a1   :  { %243 = vst.msk [vmem:[#allocation8] sm:$0x3] %vm231_vm2, %v242_v26 }
 0x3a2   :  { %342 = shalt.err (!%p339_p6)
}
 0x3a3   :  { %s343_s28 = scalar_lea.hbm %s456_s6, 32 }
 0x3a4   :  { %p344_p7 = scmp.ne.s32.totalorder %s456_s6, %s343_s28  ;;  %p347_p8 = scmp.lt.u32.totalorder %s343_s28, %s456_s6 }
 0x3a6   :  { %p349_p9 = pnand %p347_p8, %p344_p7 }
 0x3a8   :  { %352 = shalt.err (!%p349_p9)
}
 0x3a9   :  { %253 = dma.vmem_to_hbm [thread:$0]  %s251_s3, 32, %s456_s6, [#allocation5]  }
 0x3aa   :  { %357 = dma.done.wait [#allocation5], 32  }
 0x3ab   :  { %358 = vsyncadd [#allocation5], 4294967264 }
 0x3ac   :  { %257 = vsyncpa [#allocation4], 1 }
 0x3ad   :  { %258 = vsyncpa [#allocation7], 1 }
 0x3ae   :  { %259 = vsyncpa [#allocation5], 1 }

</bundles_post_ra>
